<compile_context>
chip_gen: v7x
topology: tpu7x:2x2x1
jax: 0.10.0
libtpu: 0.0.40
codegen_flags: <defaults>
</compile_context>

<pallas_src>
import math
import functools

import jax
import jax.numpy as jnp
from jax.experimental import pallas as pl
from jax.experimental.pallas import tpu as pltpu


_MXU_DTYPE = jnp.bfloat16          # MXU operand dtype (f32 accumulate); use jnp.float32 for exact parity
_VMEM_LIMIT = 48 * 1024 * 1024     # explicit scoped-VMEM cap, safe on v5e/v6e/v7x
_LN_EPS = 1e-12                    # espnet LayerNorm eps


def _mxu_dot(a, b):
    """MXU matmul: bf16 operands, f32 accumulation."""
    return jnp.dot(a.astype(_MXU_DTYPE), b.astype(_MXU_DTYPE),
                   preferred_element_type=jnp.float32)


def _mxu_dot_t(a, b):
    """a @ b.T without materializing a transpose (contract the last dims)."""
    dims = (((1,), (1,)), ((), ()))
    return jax.lax.dot_general(a.astype(_MXU_DTYPE), b.astype(_MXU_DTYPE), dims,
                               preferred_element_type=jnp.float32)


# ----------------------------- pltpu.roll direction probe -----------------------------

_ROLL_NP = None   # (lane axis matches np.roll, sublane axis matches np.roll)


def _probe_roll_convention():
    """Pin down pltpu.roll's rotation direction once with a tiny kernel."""
    global _ROLL_NP
    if _ROLL_NP is not None:
        return _ROLL_NP

    def kernel(x_ref, a_ref, b_ref):
        a_ref[...] = pltpu.roll(x_ref[...], 3, 1)
        b_ref[...] = pltpu.roll(x_ref[...], 3, 0)

    x = jnp.arange(8 * 128, dtype=jnp.float32).reshape(8, 128)
    a, b = pl.pallas_call(
        kernel,
        out_shape=(jax.ShapeDtypeStruct((8, 128), jnp.float32),
                   jax.ShapeDtypeStruct((8, 128), jnp.float32)),
    )(x)
    _ROLL_NP = (bool(jnp.array_equal(a, jnp.roll(x, 3, axis=1))),
                bool(jnp.array_equal(b, jnp.roll(x, 3, axis=0))))
    return _ROLL_NP


def _np_roll(x, shift, axis, np_like):
    """np.roll(x, shift, axis) built on pltpu.roll (direction pinned by probe)."""
    size = x.shape[axis]
    shift = shift % size
    if shift == 0:
        return x
    if not np_like:
        shift = size - shift
    return pltpu.roll(x, shift, axis)


def _variable_lane_roll(x, amt, np_like):
    """Per-row circular roll along lanes: out[i, j] = x[i, (j - amt[i]) % W]."""
    size = x.shape[-1]
    for b in range((size - 1).bit_length()):
        step = 1 << b
        rolled = _np_roll(x, step, 1, np_like)
        x = jnp.where((amt & step) != 0, rolled, x)
    return x


# ----------------------------- generic fused dense kernel -----------------------------

def _dense_kernel(*refs, has_ln, has_bias, act):
    idx = 0
    x_ref = refs[idx]; idx += 1
    if has_ln:
        g_ref, bt_ref = refs[idx], refs[idx + 1]; idx += 2
    w_ref = refs[idx]; idx += 1
    if has_bias:
        bias_ref = refs[idx]; idx += 1
    o_ref = refs[idx]

    x = x_ref[...]
    if has_ln:
        mu = jnp.mean(x, axis=-1, keepdims=True)
        var = jnp.mean(jnp.square(x - mu), axis=-1, keepdims=True)
        x = (x - mu) * jax.lax.rsqrt(var + _LN_EPS) * g_ref[...] + bt_ref[...]
    y = _mxu_dot(x, w_ref[...])
    if has_bias:
        y = y + bias_ref[...]
    if act == "relu":
        y = jnp.maximum(y, 0.0)
    elif act == "swish":
        y = y * jax.nn.sigmoid(y)
    o_ref[...] = y


def pallas_dense(x2d, w, b=None, *, gamma=None, beta=None, act="none",
                 block_m=256, block_n=512):
    """y = act(LN?(x) @ w + b), tiled over (M, N); K kept whole per tile."""
    M, K = x2d.shape
    N = w.shape[1]
    bm = min(block_m, M)
    bn = min(block_n, N)
    has_ln = gamma is not None
    has_bias = b is not None

    in_specs = [pl.BlockSpec((bm, K), lambda i, j: (i, 0))]
    args = [x2d.astype(jnp.float32)]
    if has_ln:
        in_specs += [pl.BlockSpec((1, K), lambda i, j: (0, 0)),
                     pl.BlockSpec((1, K), lambda i, j: (0, 0))]
        args += [gamma.reshape(1, K).astype(jnp.float32),
                 beta.reshape(1, K).astype(jnp.float32)]
    in_specs.append(pl.BlockSpec((K, bn), lambda i, j: (0, j)))
    args.append(w.astype(jnp.float32))
    if has_bias:
        in_specs.append(pl.BlockSpec((1, bn), lambda i, j: (0, j)))
        args.append(b.reshape(1, N).astype(jnp.float32))

    kernel = functools.partial(_dense_kernel, has_ln=has_ln, has_bias=has_bias, act=act)
    return pl.pallas_call(
        kernel,
        grid=(pl.cdiv(M, bm), pl.cdiv(N, bn)),
        in_specs=in_specs,
        out_specs=pl.BlockSpec((bm, bn), lambda i, j: (i, j)),
        out_shape=jax.ShapeDtypeStruct((M, N), jnp.float32),
        compiler_params=pltpu.CompilerParams(
            dimension_semantics=("parallel", "parallel"),
            vmem_limit_bytes=_VMEM_LIMIT),
    )(*args)


# ----------------------------- fused feed-forward block -----------------------------

def _ffn_kernel(x_ref, g_ref, bt_ref, w1_ref, b1_ref, w2_ref, b2_ref, o_ref):
    x = x_ref[...]
    mu = jnp.mean(x, axis=-1, keepdims=True)
    var = jnp.mean(jnp.square(x - mu), axis=-1, keepdims=True)
    xn = (x - mu) * jax.lax.rsqrt(var + _LN_EPS) * g_ref[...] + bt_ref[...]
    h = _mxu_dot(xn, w1_ref[...]) + b1_ref[...]
    h = h * jax.nn.sigmoid(h)                       # swish, f32
    y = _mxu_dot(h, w2_ref[...]) + b2_ref[...]
    o_ref[...] = x + y                              # residual


def pallas_ffn(x2d, gamma, beta, w1, b1, w2, b2, *, block_m=128):
    M, D = x2d.shape
    FF = w1.shape[1]
    bm = min(block_m, M)
    return pl.pallas_call(
        _ffn_kernel,
        grid=(pl.cdiv(M, bm),),
        in_specs=[pl.BlockSpec((bm, D), lambda i: (i, 0)),
                  pl.BlockSpec((1, D), lambda i: (0, 0)),
                  pl.BlockSpec((1, D), lambda i: (0, 0)),
                  pl.BlockSpec((D, FF), lambda i: (0, 0)),
                  pl.BlockSpec((1, FF), lambda i: (0, 0)),
                  pl.BlockSpec((FF, D), lambda i: (0, 0)),
                  pl.BlockSpec((1, D), lambda i: (0, 0))],
        out_specs=pl.BlockSpec((bm, D), lambda i: (i, 0)),
        out_shape=jax.ShapeDtypeStruct((M, D), jnp.float32),
        compiler_params=pltpu.CompilerParams(
            dimension_semantics=("parallel",),
            vmem_limit_bytes=_VMEM_LIMIT),
    )(x2d, gamma.reshape(1, D), beta.reshape(1, D), w1, b1.reshape(1, FF), w2,
      b2.reshape(1, D))


# ----------------------------- LayerNorm (after_norm) -----------------------------

def _ln_kernel(x_ref, g_ref, b_ref, o_ref):
    x = x_ref[...]
    mu = jnp.mean(x, axis=-1, keepdims=True)
    var = jnp.mean(jnp.square(x - mu), axis=-1, keepdims=True)
    o_ref[...] = (x - mu) * jax.lax.rsqrt(var + _LN_EPS) * g_ref[...] + b_ref[...]


def pallas_layernorm(x2d, gamma, beta, *, block_m=256):
    M, D = x2d.shape
    bm = min(block_m, M)
    return pl.pallas_call(
        _ln_kernel,
        grid=(pl.cdiv(M, bm),),
        in_specs=[pl.BlockSpec((bm, D), lambda i: (i, 0)),
                  pl.BlockSpec((1, D), lambda i: (0, 0)),
                  pl.BlockSpec((1, D), lambda i: (0, 0))],
        out_specs=pl.BlockSpec((bm, D), lambda i: (i, 0)),
        out_shape=jax.ShapeDtypeStruct((M, D), jnp.float32),
        compiler_params=pltpu.CompilerParams(
            dimension_semantics=("parallel",),
            vmem_limit_bytes=_VMEM_LIMIT),
    )(x2d, gamma.reshape(1, D), beta.reshape(1, D))


# ----------------------------- fused rel-pos self-attention -----------------------------

def _attn_kernel(qkv_ref, x_ref, p_ref, u_ref, vb_ref, m_ref, wo_ref, bo_ref, o_ref,
                 *, H, dk, scale, shift2, roll_np):
    lane_np, sub_np = roll_np
    W = qkv_ref.shape[1]
    D = H * dk
    qkv = qkv_ref[0]                     # (W, 3D)
    p = p_ref[...]                       # (W, D)  (front-padded positional proj)
    u = u_ref[...]                       # (1, D)  pos_bias_u (heads flattened)
    vb = vb_ref[...]                     # (1, D)  pos_bias_v
    wo = wo_ref[...]                     # (D, D)
    keymask = m_ref[0] > 0.5             # (1, W)
    neg = jnp.finfo(jnp.float32).min

    row = jax.lax.broadcasted_iota(jnp.int32, (W, W), 0)
    col = jax.lax.broadcasted_iota(jnp.int32, (W, W), 1)
    ri = jax.lax.broadcasted_iota(jnp.int32, (W, 1), 0)
    amt = jnp.where(ri == W - 1, 0, ri + 1)          # per-row roll amount (i+1) % W

    out_acc = jnp.zeros((W, D), jnp.float32)
    for h in range(H):
        lo = h * dk
        qh = qkv[:, lo:lo + dk]
        kh = qkv[:, D + lo:D + lo + dk]
        vh = qkv[:, 2 * D + lo:2 * D + lo + dk]
        ph = p[:, lo:lo + dk]

        ac = _mxu_dot_t(qh + u[:, lo:lo + dk], kh)    # (W, W) = (q+u) @ k^T
        bd = _mxu_dot_t(qh + vb[:, lo:lo + dk], ph)   # (W, W) = (q+v) @ p^T

        # legacy rel_shift done entirely in-register (exact, incl. the legacy
        # wrap artefact), reformulated as per-row circular lane rolls:
        #   out[i, j] = bd[i, W-1-i+j]          j <= i
        #             = 0                       j == i+1
        #             = bd[i+1, j-i-2+(W-T)]    j >= i+2
        bd_next = _np_roll(bd, -1, 0, sub_np)                      # bd[i+1, :]
        part1 = _variable_lane_roll(bd, amt, lane_np)
        part2 = _np_roll(_variable_lane_roll(bd_next, amt, lane_np),
                         shift2, 1, lane_np)
        bd = (jnp.where(col <= row, part1, 0.0)
              + jnp.where(col >= row + 2, part2, 0.0))

        s = (ac + bd) * scale
        s = jnp.where(keymask, s, neg)
        smax = jnp.max(s, axis=-1, keepdims=True)
        e = jnp.exp(s - smax)
        attn = e / jnp.sum(e, axis=-1, keepdims=True)
        attn = jnp.where(keymask, attn, 0.0)

        ctx = _mxu_dot(attn, vh)                                   # (W, dk)
        out_acc = out_acc + _mxu_dot(ctx, wo[lo:lo + dk, :])       # head-merge + out proj

    o_ref[0] = x_ref[0] + out_acc + bo_ref[...]                    # residual add


def pallas_rel_attention(qkv, x, p, pos_bias_u, pos_bias_v, mask_f, wo, bo,
                         *, H, t_true, roll_np):
    B, W, D3 = qkv.shape
    D = D3 // 3
    dk = D // H
    kernel = functools.partial(
        _attn_kernel, H=H, dk=dk, scale=1.0 / math.sqrt(dk),
        shift2=(t_true + 1) % W, roll_np=roll_np)
    return pl.pallas_call(
        kernel,
        grid=(B,),
        in_specs=[pl.BlockSpec((1, W, D3), lambda b: (b, 0, 0)),
                  pl.BlockSpec((1, W, D), lambda b: (b, 0, 0)),
                  pl.BlockSpec((W, D), lambda b: (0, 0)),       # p shared, never broadcast
                  pl.BlockSpec((1, D), lambda b: (0, 0)),
                  pl.BlockSpec((1, D), lambda b: (0, 0)),
                  pl.BlockSpec((1, 1, W), lambda b: (b, 0, 0)),
                  pl.BlockSpec((D, D), lambda b: (0, 0)),
                  pl.BlockSpec((1, D), lambda b: (0, 0))],
        out_specs=pl.BlockSpec((1, W, D), lambda b: (b, 0, 0)),
        out_shape=jax.ShapeDtypeStruct((B, W, D), jnp.float32),
        compiler_params=pltpu.CompilerParams(
            dimension_semantics=("parallel",),
            vmem_limit_bytes=_VMEM_LIMIT),
    )(qkv, x, p, pos_bias_u.reshape(1, D), pos_bias_v.reshape(1, D), mask_f, wo,
      bo.reshape(1, D))


# ----------------------------- JAX glue -----------------------------

def im2col(x, kh, kw, stride):
    """x: (B,C,H,W) NCHW, valid padding -> (B,Ho,Wo,C*kh*kw), (C,kh,kw) order."""
    B, C, Hh, Ww = x.shape
    Ho = (Hh - kh) // stride + 1
    Wo = (Ww - kw) // stride + 1
    cols = []
    for i in range(kh):
        for j in range(kw):
            cols.append(x[:, :, i:i + stride * (Ho - 1) + 1:stride,
                              j:j + stride * (Wo - 1) + 1:stride])
    patches = jnp.stack(cols, axis=2)                  # (B, C, kh*kw, Ho, Wo)
    patches = patches.transpose(0, 3, 4, 1, 2)         # (B, Ho, Wo, C, kh*kw)
    return patches.reshape(B, Ho, Wo, C * kh * kw)


def legacy_rel_pos_emb(T, D):
    """LegacyRelPositionalEncoding (reverse=True sinusoid), shape (T, D)."""
    pos = jnp.arange(T - 1, -1, -1, dtype=jnp.float32)[:, None]
    div = jnp.exp(jnp.arange(0, D, 2, dtype=jnp.float32) * (-(math.log(10000.0) / D)))
    pe = jnp.zeros((T, D), dtype=jnp.float32)
    pe = pe.at[:, 0::2].set(jnp.sin(pos * div))
    pe = pe.at[:, 1::2].set(jnp.cos(pos * div))
    return pe


def encoder_layer(x, p, mask_f, lp, *, H, t_true, roll_np):
    B, W, D = x.shape
    # ---- self-attention block (normalize_before=True), LN fused into QKV matmul ----
    w_qkv = jnp.concatenate([lp["wq"], lp["wk"], lp["wv"]], axis=1)   # (D, 3D)
    b_qkv = jnp.concatenate([lp["bq"], lp["bk"], lp["bv"]], axis=0)   # (3D,)
    qkv = pallas_dense(x.reshape(-1, D), w_qkv, b_qkv,
                       gamma=lp["norm_mha_g"], beta=lp["norm_mha_b"]
                       ).reshape(B, W, 3 * D)
    x = pallas_rel_attention(qkv, x, p, lp["pos_bias_u"], lp["pos_bias_v"],
                             mask_f, lp["wo"], lp["bo"],
                             H=H, t_true=t_true, roll_np=roll_np)
    # ---- feed-forward block, fully fused (LN + W1 + swish + W2 + residual) ----
    x = pallas_ffn(x.reshape(-1, D), lp["norm_ff_g"], lp["norm_ff_b"],
                   lp["ff_w1"], lp["ff_b1"], lp["ff_w2"], lp["ff_b2"]
                   ).reshape(B, W, D)
    return x


def encoder_forward(params, xs, masks, *, D, H, roll_np):
    B, T, idim = xs.shape
    # ---- Conv2dSubsampling: Conv2d(1,D,3,2)+ReLU, Conv2d(D,D,3,2)+ReLU, Linear ----
    x4 = xs[:, None, :, :].astype(jnp.float32)              # (B,1,T,idim) NCHW
    p1 = im2col(x4, 3, 3, 2)
    _, T1, F1, K1 = p1.shape
    h1 = pallas_dense(p1.reshape(-1, K1), params["conv1_w"].reshape(D, K1).T,
                      params["conv1_b"], act="relu")
    h1 = h1.reshape(B, T1, F1, D).transpose(0, 3, 1, 2)     # (B,D,T1,F1)
    p2 = im2col(h1, 3, 3, 2)
    _, T2, F2, K2 = p2.shape
    h2 = pallas_dense(p2.reshape(-1, K2), params["conv2_w"].reshape(D, K2).T,
                      params["conv2_b"], act="relu")
    h2 = h2.reshape(B, T2, F2, D).transpose(0, 1, 3, 2).reshape(B, T2, D * F2)
    xscale = math.sqrt(D)                                   # pos-enc x*sqrt(D) folded in
    x = pallas_dense(h2.reshape(-1, D * F2), params["embed_lin_w"] * xscale,
                     params["embed_lin_b"] * xscale).reshape(B, T2, D)
    masks_sub = masks[:, :, :-2:2][:, :, :-2:2]             # subsample mask like torch

    # ---- pad time to a lane-aligned width; masking keeps semantics exact ----
    W = ((T2 + 127) // 128) * 128
    pad_t = W - T2
    x = jnp.pad(x, ((0, 0), (0, pad_t), (0, 0)))
    mask_f = jnp.pad(masks_sub.astype(jnp.float32), ((0, 0), (0, 0), (0, pad_t)))
    pos = jnp.pad(legacy_rel_pos_emb(T2, D), ((pad_t, 0), (0, 0)))   # front-pad pe

    for lp in params["layers"]:
        p = pallas_dense(pos, lp["wpos"])                   # (W, D), linear_pos has no bias
        x = encoder_layer(x, p, mask_f, lp, H=H, t_true=T2, roll_np=roll_np)

    x = pallas_layernorm(x.reshape(-1, D), params["after_norm_g"],
                         params["after_norm_b"]).reshape(B, W, D)
    return x[:, :T2, :], masks_sub


# ----------------------------- parameter init -----------------------------

def init_params(key, idim, D, H, FF, num_blocks):
    dk = D // H
    keys = list(jax.random.split(key, 16 * num_blocks + 16))
    kit = iter(keys)

    def nrm(shape, scale=0.05):
        return (scale * jax.random.normal(next(kit), shape)).astype(jnp.float32)

    f1 = (idim - 1) // 2
    f2 = (f1 - 1) // 2
    params = {
        "conv1_w": nrm((D, 1, 3, 3)), "conv1_b": nrm((D,)),
        "conv2_w": nrm((D, D, 3, 3)), "conv2_b": nrm((D,)),
        "embed_lin_w": nrm((D * f2, D)), "embed_lin_b": nrm((D,)),
        "after_norm_g": jnp.ones((D,), jnp.float32),
        "after_norm_b": jnp.zeros((D,), jnp.float32),
        "layers": [],
    }
    for _ in range(num_blocks):
        lp = {
            "norm_mha_g": jnp.ones((D,), jnp.float32), "norm_mha_b": jnp.zeros((D,), jnp.float32),
            "norm_ff_g": jnp.ones((D,), jnp.float32), "norm_ff_b": jnp.zeros((D,), jnp.float32),
            "wq": nrm((D, D)), "bq": nrm((D,)),
            "wk": nrm((D, D)), "bk": nrm((D,)),
            "wv": nrm((D, D)), "bv": nrm((D,)),
            "wpos": nrm((D, D)),                      # linear_pos has no bias
            "wo": nrm((D, D)), "bo": nrm((D,)),
            "pos_bias_u": nrm((H, dk)), "pos_bias_v": nrm((H, dk)),
            "ff_w1": nrm((D, FF)), "ff_b1": nrm((FF,)),
            "ff_w2": nrm((FF, D)), "ff_b2": nrm((D,)),
        }
        params["layers"].append(lp)
    return params


# ----------------------------- main -----------------------------

if __name__ == "__main__":
    B, T, IDIM = 2, 32, 16          # input: (batch, time, idim)
    D, H, FF, NUM_BLOCKS = 32, 4, 64, 2

    key = jax.random.PRNGKey(0)
    k_in, k_par = jax.random.split(key)
    xs = jax.random.normal(k_in, (B, T, IDIM), dtype=jnp.float32)
    lengths = jnp.array([T, T - 5])
    masks = (jnp.arange(T)[None, :] < lengths[:, None])[:, None, :]   # (B,1,T) bool

    params = init_params(k_par, IDIM, D, H, FF, NUM_BLOCKS)
    roll_np = _probe_roll_convention()

    fwd = jax.jit(functools.partial(encoder_forward, D=D, H=H, roll_np=roll_np))
    out, out_masks = fwd(params, xs, masks)
    jax.block_until_ready(out)
    jax.block_until_ready(out_masks)

    T2 = ((T - 1) // 2 - 1) // 2
    assert out.shape == (B, T2, D), out.shape
    assert out_masks.shape == (B, 1, T2), out_masks.shape
    print("KERNEL_OK")
</pallas_src>

<mosaic_0001>
module attributes {stable_mosaic.version = 11 : i64} {
  func.func @kernel(%arg0: memref<8x128xf32, #tpu.memory_space<vmem>>, %arg1: memref<8x128xf32, #tpu.memory_space<vmem>>, %arg2: memref<8x128xf32, #tpu.memory_space<vmem>>) attributes {dimension_semantics = [], scalar_prefetch = 0 : i64, scratch_operands = 0 : i64, tpu.core_type = #tpu.core_type<tc>} {
    %c0 = arith.constant 0 : index
    %c0_0 = arith.constant 0 : index
    %0 = vector.load %arg0[%c0, %c0_0] : memref<8x128xf32, #tpu.memory_space<vmem>>, vector<8x128xf32>
    %c3_i32 = arith.constant 3 : i32
    %1 = tpu.dynamic_rotate %0 by %c3_i32 dim 1 : vector<8x128xf32>, i32 -> vector<8x128xf32>
    %c0_1 = arith.constant 0 : index
    %c0_2 = arith.constant 0 : index
    %2 = vector.load %arg1[%c0_1, %c0_2] : memref<8x128xf32, #tpu.memory_space<vmem>>, vector<8x128xf32>
    tpu.vector_store %arg1[%c0_1, %c0_2], %1 {strides = array<i32>} : memref<8x128xf32, #tpu.memory_space<vmem>>, vector<8x128xf32>,
    %c0_3 = arith.constant 0 : index
    %c0_4 = arith.constant 0 : index
    %3 = vector.load %arg0[%c0_3, %c0_4] : memref<8x128xf32, #tpu.memory_space<vmem>>, vector<8x128xf32>
    %c3_i32_5 = arith.constant 3 : i32
    %4 = tpu.dynamic_rotate %3 by %c3_i32_5 dim 0 : vector<8x128xf32>, i32 -> vector<8x128xf32>
    %c0_6 = arith.constant 0 : index
    %c0_7 = arith.constant 0 : index
    %5 = vector.load %arg2[%c0_6, %c0_7] : memref<8x128xf32, #tpu.memory_space<vmem>>, vector<8x128xf32>
    tpu.vector_store %arg2[%c0_6, %c0_7], %4 {strides = array<i32>} : memref<8x128xf32, #tpu.memory_space<vmem>>, vector<8x128xf32>,
    return
  }
}

</mosaic_0001>

<bundles_post_ra>
// kernel: tpu_custom_call.1
= control target key start
LH: loop header
LB: loop body
LE: loop exit
PB: predicated region body
PF: predicated region fallthrough
CT: control target
= control target key end

     0   :  { %8 = vsyncpa [#allocation3], 0  ;;  %s191_s0 = inlined_call_operand.hbm [shape: f32[8,128], index: 0, kind: input, shape index: {}]   ;;  %s192_s1 = inlined_call_operand.hbm [shape: f32[8,128], index: 1, kind: output, shape index: {0}]   ;;  %s193_s2 = inlined_call_operand.hbm [shape: f32[8,128], index: 2, kind: output, shape index: {1}]  }
   0x1   :  { %9 = vsyncpa [#allocation4], 0 }
   0x2   :  { %10 = vsyncpa [#allocation7], 0  ;;  %s136_s9 = smov [#allocation2]   ;;  %s64_s13 = scalar_lea.hbm %s191_s0, 128 }
   0x3   :  { %s17_s10 = sshll.u32 %s136_s9, 4  ;;  %p65_p0 = scmp.ne.s32.totalorder %s191_s0, %s64_s13  ;;  %s18_s10 = int_to_ptr.vmem [resolvable:$true] %s17_s10 }
   0x4   :  { %p68_p1 = scmp.lt.u32.totalorder %s64_s13, %s191_s0 }
   0x6   :  { %p70_p2 = pnand %p68_p1, %p65_p0 }
   0x8   :  { %73 = shalt.err (!%p70_p2)
}
   0x9   :  { %s74_s18 = scalar_lea.vmem %s18_s10, 128  ;;  %p79_p4 = scmp.lt.s32.totalorder %s18_s10, %s18_s10 }
   0xa   :  { %p75_p3 = scmp.ne.s32.totalorder %s18_s10, %s74_s18  ;;  %p80_p5 = scmp.lt.s32.totalorder %s74_s18, %s74_s18 }
   0xc   :  { %p81_p6 = por %p80_p5, %p79_p4 }
   0xe   :  { %p82_p7 = pnand %p81_p6, %p75_p3 }
  0x10   :  { %85 = shalt.err (!%p82_p7)
}
  0x11   :  { %20 = dma.hbm_to_vmem [thread:$0]  %s191_s0, 128, %s18_s10, [#allocation3]  }
  0x12   :  { %130 = dma.done.wait [#allocation3], 128  }
  0x13   :  { %131 = vsyncadd [#allocation3], 4294967168  ;;  %s137_s21 = smov [#allocation6]   ;;  %v24_v0 = vld [vmem:[#allocation2] sm:$0xff]  ;;  %s138_s23 = smov 3  }
  0x14   :  { %s47_s22 = sshll.u32 %s137_s21, 4  ;;  %25 = vrot.lane.b32.xlu0 %v24_v0, %s138_s23  ;;  %v29_v1 = vrot.slane %v24_v0, 5  ;;  %s48_s22 = int_to_ptr.vmem [resolvable:$true] %s47_s22 }
  0x15   :  { %s86_s24 = scalar_lea.vmem %s48_s22, 128  ;;  %p91_p9 = scmp.lt.s32.totalorder %s48_s22, %s48_s22 }
  0x16   :  { %30 = vst [vmem:[#allocation6] sm:$0xff] %v29_v1  ;;  %p87_p8 = scmp.ne.s32.totalorder %s48_s22, %s86_s24  ;;  %p92_p10 = scmp.lt.s32.totalorder %s86_s24, %s86_s24 }
  0x18   :  { %p93_p11 = por %p92_p10, %p91_p9 }
  0x1a   :  { %p94_p12 = pnand %p93_p11, %p87_p8 }
  0x1c   :  { %97 = shalt.err (!%p94_p12)
}
  0x1d   :  { %s98_s0 = scalar_lea.hbm %s193_s2, 128 }
  0x1e   :  { %p99_p13 = scmp.ne.s32.totalorder %s193_s2, %s98_s0  ;;  %p102_p0 = scmp.lt.u32.totalorder %s98_s0, %s193_s2 }
  0x20   :  { %p104_p1 = pnand %p102_p0, %p99_p13 }
  0x22   :  { %107 = shalt.err (!%p104_p1)
}
  0x23   :  { %50 = dma.vmem_to_hbm [thread:$0]  %s48_s22, 128, %s193_s2, [#allocation7]  }
  0x24   :  { %s139_s5 = smov [#allocation5]  }
  0x25   :  { %s37_s6 = sshll.u32 %s139_s5, 4  ;;  %s38_s6 = int_to_ptr.vmem [resolvable:$true] %s37_s6 }
  0x26   :  { %s108_s7 = scalar_lea.vmem %s38_s6, 128  ;;  %p113_p3 = scmp.lt.s32.totalorder %s38_s6, %s38_s6 }
  0x27   :  { %p109_p2 = scmp.ne.s32.totalorder %s38_s6, %s108_s7  ;;  %p114_p4 = scmp.lt.s32.totalorder %s108_s7, %s108_s7 }
  0x29   :  { %p115_p5 = por %p114_p4, %p113_p3 }
  0x2b   :  { %p116_p6 = pnand %p115_p5, %p109_p2 }
  0x86   :  { %v26_v2 = vpop.permute.xlu0 %25 }
  0x87   :  { %27 = vst [vmem:[#allocation5] sm:$0xff] %v26_v2 }
  0x88   :  { %119 = shalt.err (!%p116_p6)
}
  0x89   :  { %s120_s10 = scalar_lea.hbm %s192_s1, 128 }
  0x8a   :  { %p121_p7 = scmp.ne.s32.totalorder %s192_s1, %s120_s10  ;;  %p124_p8 = scmp.lt.u32.totalorder %s120_s10, %s192_s1 }
  0x8c   :  { %p126_p9 = pnand %p124_p8, %p121_p7 }
  0x8e   :  { %129 = shalt.err (!%p126_p9)
}
  0x8f   :  { %40 = dma.vmem_to_hbm [thread:$0]  %s38_s6, 128, %s192_s1, [#allocation4]  }
  0x90   :  { %132 = dma.done.wait [#allocation4], 128  }
  0x91   :  { %133 = vsyncadd [#allocation4], 4294967168 }
  0x92   :  { %134 = dma.done.wait [#allocation7], 128  }
  0x93   :  { %135 = vsyncadd [#allocation7], 4294967168 }
  0x94   :  { %57 = vsyncpa [#allocation3], 1 }
  0x95   :  { %58 = vsyncpa [#allocation4], 1 }
  0x96   :  { %59 = vsyncpa [#allocation7], 1 }

</bundles_post_ra>
